<compile_context>
chip_gen: v5e
topology: v5e:2x2
jax: 0.10.0
libtpu: 0.0.40
codegen_flags: <defaults>
</compile_context>

<pallas_src>
import numpy as np
import jax
import jax.numpy as jnp
from jax.experimental import pallas as pl
from jax.experimental.pallas import tpu as pltpu


def _round_up(a, m):
    return ((a + m - 1) // m) * m


def _make_hypo_mlp_kernel(depth, use_pe, out_bias, mm_dtype):
    """Kernel for one (batch, row-tile) grid point.

    Ref order: x, [F], layer-0 weights (w0c, w0s, b0) or (w0, b0),
               then (wi, bi) for i=1..depth-1, then the output.
    All activations are (features, tile_n): features on sublanes,
    rows on lanes.
    """
    out_bias = float(out_bias)
    mm_dtype = jnp.dtype(mm_dtype)
    f32 = jnp.dtype(jnp.float32)

    def mm(a, b):
        if mm_dtype != f32:
            a = a.astype(mm_dtype)
            b = b.astype(mm_dtype)
        return jnp.dot(a, b, preferred_element_type=jnp.float32)

    def kernel(*refs):
        idx = 0
        x_ref = refs[idx]; idx += 1                      # (in_dim, tile_n)
        if use_pe:
            f_ref = refs[idx]; idx += 1                  # (P, in_dim)
            w0c_ref = refs[idx]                          # (d_out0, P)
            w0s_ref = refs[idx + 1]                      # (d_out0, P)
            b0_ref = refs[idx + 2]                       # (d_out0, 1)
            idx += 3
        else:
            w0_ref = refs[idx]                           # (d_out0, in_dim)
            b0_ref = refs[idx + 1]                       # (d_out0, 1)
            idx += 2
        layer_refs = []
        for _ in range(depth - 1):
            layer_refs.append((refs[idx], refs[idx + 1]))
            idx += 2
        o_ref = refs[idx]                                # (out_dim, tile_n)

        x = x_ref[...]                                   # (in_dim, tile_n) f32

        if use_pe:
            # posenc as a single tiny matmul (pi already folded into F),
            # then split-weight first layer: cos@W0c + sin@W0s + b0.
            xw = jnp.dot(f_ref[...], x,
                         preferred_element_type=jnp.float32)   # (P, tile_n)
            h = (mm(w0c_ref[...], jnp.cos(xw))
                 + mm(w0s_ref[...], jnp.sin(xw))
                 + b0_ref[...])
        else:
            h = mm(w0_ref[...], x) + b0_ref[...]

        if depth > 1:
            h = jnp.maximum(h, 0.0)

        for i, (w_ref, b_ref) in enumerate(layer_refs):
            h = mm(w_ref[...], h) + b_ref[...]
            if i < depth - 2:                            # hidden layers only
                h = jnp.maximum(h, 0.0)

        h = h + out_bias                                 # applied after last layer
        o_ref[...] = h.astype(o_ref.dtype)

    return kernel


def hypo_mlp_forward(x, params, *, depth, hidden_dim, out_dim, use_pe, pe_dim,
                     pe_sigma=1024.0, out_bias=0.0, max_tile_n=2048,
                     matmul_dtype=jnp.float32):
    """Pallas implementation of HypoMlp.forward with params set via set_params.

    x:      (B, *query_shape, in_dim) float32 coordinates
    params: dict of 'wb{i}' -> (B, layer_in+1, layer_out) float32
            (last row of each wb is the bias, as in batched_linear_mm)
    """
    B = x.shape[0]
    query_shape = x.shape[1:-1]
    in_dim = x.shape[-1]
    N = int(np.prod(query_shape))
    mm_dtype = jnp.dtype(matmul_dtype)

    # Per-layer dims (mirrors HypoMlp.__init__).
    d0 = in_dim * pe_dim if use_pe else in_dim
    layer_in, layer_out = [], []
    last = d0
    for i in range(depth):
        cur = hidden_dim if i < depth - 1 else out_dim
        layer_in.append(last)
        layer_out.append(cur)
        last = cur

    # Tiling: large lane-dense tiles, pad N to a multiple of tile_n.
    tile_n = min(_round_up(N, 128), int(max_tile_n))
    n_tiles = pl.cdiv(N, tile_n)
    n_pad = n_tiles * tile_n

    # Channel-first (lane-dense) input layout: (B, in_dim, N_pad).
    xT = jnp.swapaxes(x.reshape(B, N, in_dim).astype(jnp.float32), 1, 2)
    if n_pad != N:
        xT = jnp.pad(xT, ((0, 0), (0, 0), (0, n_pad - N)))

    wbs = [jnp.asarray(params[f'wb{i}'], jnp.float32) for i in range(depth)]
    for i in range(depth):
        assert wbs[i].shape == (B, layer_in[i] + 1, layer_out[i]), wbs[i].shape

    # --- Prepare kernel inputs (all weight transposes done once, outside) ---
    call_args = [xT]
    in_specs = [pl.BlockSpec((None, in_dim, tile_n), lambda b, n: (b, 0, n))]

    def _wmap(b, n):
        return (b, 0, 0)

    weight_args = []
    if use_pe:
        pe_half = pe_dim // 2
        P = in_dim * pe_half
        w_pe = np.exp(np.linspace(0.0, np.log(pe_sigma), pe_half)).astype(np.float32)
        # Block-diagonal frequency matrix, pi folded in:
        # (F @ x)[d*pe_half + f] = pi * w_pe[f] * x[d]  (coord-major, freq-minor)
        F = np.zeros((P, in_dim), np.float32)
        for d in range(in_dim):
            F[d * pe_half:(d + 1) * pe_half, d] = np.pi * w_pe
        F = jnp.asarray(F)
        call_args.append(F)
        in_specs.append(pl.BlockSpec((P, in_dim), lambda b, n: (0, 0)))

        wb0 = wbs[0]
        w0c = jnp.swapaxes(wb0[:, :P, :], 1, 2)          # (B, out0, P) cos rows
        w0s = jnp.swapaxes(wb0[:, P:2 * P, :], 1, 2)     # (B, out0, P) sin rows
        b0 = wb0[:, layer_in[0], :][:, :, None]          # (B, out0, 1)
        weight_args += [w0c.astype(mm_dtype), w0s.astype(mm_dtype), b0]
    else:
        wb0 = wbs[0]
        w0 = jnp.swapaxes(wb0[:, :in_dim, :], 1, 2)      # (B, out0, in_dim)
        b0 = wb0[:, layer_in[0], :][:, :, None]
        weight_args += [w0.astype(mm_dtype), b0]

    for i in range(1, depth):
        wT = jnp.swapaxes(wbs[i][:, :layer_in[i], :], 1, 2)   # (B, out_i, in_i)
        b = wbs[i][:, layer_in[i], :][:, :, None]             # (B, out_i, 1)
        weight_args += [wT.astype(mm_dtype), b]

    for arr in weight_args:
        call_args.append(arr)
        in_specs.append(pl.BlockSpec((None,) + arr.shape[1:], _wmap))

    out_spec = pl.BlockSpec((None, out_dim, tile_n), lambda b, n: (b, 0, n))

    kernel = _make_hypo_mlp_kernel(depth, use_pe, out_bias, mm_dtype)

    outT = pl.pallas_call(
        kernel,
        out_shape=jax.ShapeDtypeStruct((B, out_dim, n_pad), jnp.float32),
        grid=(B, n_tiles),
        in_specs=in_specs,
        out_specs=out_spec,
        compiler_params=pltpu.CompilerParams(
            dimension_semantics=("parallel", "parallel")),
    )(*call_args)

    out = jnp.swapaxes(outT[:, :, :N], 1, 2)             # (B, N, out_dim)
    return out.reshape(B, *query_shape, out_dim)


def hypo_mlp_reference(x, params, *, depth, hidden_dim, out_dim, use_pe, pe_dim,
                       pe_sigma=1024.0, out_bias=0.0):
    """Pure-JAX reference matching the PyTorch module."""
    B = x.shape[0]
    query_shape = x.shape[1:-1]
    in_dim = x.shape[-1]
    h = x.reshape(B, -1, in_dim).astype(jnp.float32)
    if use_pe:
        w = jnp.exp(jnp.linspace(0.0, np.log(pe_sigma), pe_dim // 2))
        hw = (h[..., None] * w[None, None, None, :]).reshape(B, h.shape[1], -1)
        h = jnp.concatenate([jnp.cos(np.pi * hw), jnp.sin(np.pi * hw)], axis=-1)
    for i in range(depth):
        wb = params[f'wb{i}'].astype(jnp.float32)
        ones = jnp.ones(h.shape[:-1] + (1,), dtype=h.dtype)
        h = jnp.einsum('bnd,bde->bne', jnp.concatenate([h, ones], axis=-1), wb,
                       precision=jax.lax.Precision.HIGHEST)
        if i < depth - 1:
            h = jnp.maximum(h, 0.0)
        else:
            h = h + out_bias
    return h.reshape(B, *query_shape, -1)


if __name__ == "__main__":
    # Small deterministic config.
    B = 2
    H = W = 16                 # query_shape = (16, 16) -> N = 256
    in_dim = 2                 # 2D coordinates
    depth = 3
    hidden_dim = 32
    out_dim = 3
    use_pe = True
    pe_dim = 8                 # posenc expands in_dim -> in_dim * pe_dim = 16
    pe_sigma = 1024.0
    out_bias = 0.5

    key = jax.random.PRNGKey(0)
    k_x, k_p = jax.random.split(key)

    # Coordinates in [0, 1).
    x = jax.random.uniform(k_x, (B, H, W, in_dim), dtype=jnp.float32)

    # Per-instance hypernetwork parameters (deterministic synthetic init).
    params = {}
    last = in_dim * pe_dim if use_pe else in_dim
    for i in range(depth):
        cur = hidden_dim if i < depth - 1 else out_dim
        k_p, sub = jax.random.split(k_p)
        params[f'wb{i}'] = (
            jax.random.normal(sub, (B, last + 1, cur), dtype=jnp.float32)
            * (1.0 / np.sqrt(last + 1)))
        last = cur

    out = hypo_mlp_forward(
        x, params, depth=depth, hidden_dim=hidden_dim, out_dim=out_dim,
        use_pe=use_pe, pe_dim=pe_dim, pe_sigma=pe_sigma, out_bias=out_bias)
    out = jax.block_until_ready(out)

    ref = hypo_mlp_reference(
        x, params, depth=depth, hidden_dim=hidden_dim, out_dim=out_dim,
        use_pe=use_pe, pe_dim=pe_dim, pe_sigma=pe_sigma, out_bias=out_bias)
    ref = jax.block_until_ready(ref)

    assert out.shape == (B, H, W, out_dim), out.shape
    np.testing.assert_allclose(np.asarray(out), np.asarray(ref),
                               rtol=1e-4, atol=1e-4)
    print("KERNEL_OK")
</pallas_src>

<mosaic_0001>
module attributes {stable_mosaic.version = 11 : i64} {
  func.func @kernel(%arg0: i32, %arg1: i32, %arg2: memref<1x2x256xf32, #tpu.memory_space<vmem>>, %arg3: memref<8x2xf32, #tpu.memory_space<vmem>>, %arg4: memref<1x32x8xf32, #tpu.memory_space<vmem>>, %arg5: memref<1x32x8xf32, #tpu.memory_space<vmem>>, %arg6: memref<1x32x1xf32, #tpu.memory_space<vmem>>, %arg7: memref<1x32x32xf32, #tpu.memory_space<vmem>>, %arg8: memref<1x32x1xf32, #tpu.memory_space<vmem>>, %arg9: memref<1x3x32xf32, #tpu.memory_space<vmem>>, %arg10: memref<1x3x1xf32, #tpu.memory_space<vmem>>, %arg11: memref<1x3x256xf32, #tpu.memory_space<vmem>>) attributes {dimension_semantics = [#tpu.dimension_semantics<parallel>, #tpu.dimension_semantics<parallel>], iteration_bounds = array<i64: 2, 1>, scalar_prefetch = 0 : i64, scratch_operands = 0 : i64, tpu.core_type = #tpu.core_type<tc>, window_params = [{transform_indices = @transform_0, window_bounds = array<i64: 1, 2, 256>}, {pipeline_mode = #tpu.pipeline_mode<synchronous>, transform_indices = @transform_1, window_bounds = array<i64: 8, 2>}, {transform_indices = @transform_2, window_bounds = array<i64: 1, 32, 8>}, {transform_indices = @transform_3, window_bounds = array<i64: 1, 32, 8>}, {transform_indices = @transform_4, window_bounds = array<i64: 1, 32, 1>}, {transform_indices = @transform_5, window_bounds = array<i64: 1, 32, 32>}, {transform_indices = @transform_6, window_bounds = array<i64: 1, 32, 1>}, {transform_indices = @transform_7, window_bounds = array<i64: 1, 3, 32>}, {transform_indices = @transform_8, window_bounds = array<i64: 1, 3, 1>}, {transform_indices = @transform_9, window_bounds = array<i64: 1, 3, 256>}]} {
    %c0 = arith.constant 0 : index
    %c0_0 = arith.constant 0 : index
    %c0_1 = arith.constant 0 : index
    %0 = vector.load %arg2[%c0, %c0_0, %c0_1] : memref<1x2x256xf32, #tpu.memory_space<vmem>>, vector<1x2x256xf32>
    %1 = vector.shape_cast %0 : vector<1x2x256xf32> to vector<2x256xf32>
    %c0_2 = arith.constant 0 : index
    %c0_3 = arith.constant 0 : index
    %2 = vector.load %arg3[%c0_2, %c0_3] : memref<8x2xf32, #tpu.memory_space<vmem>>, vector<8x2xf32>
    %cst = arith.constant dense<0.000000e+00> : vector<8x256xf32>
    %3 = tpu.matmul %2, %1, %cst {dimension_numbers = #tpu.dot_dimension_numbers<[1], [0], [0], [1], [0, 0, 1, 1], [], []>} : vector<8x2xf32>, vector<2x256xf32>, vector<8x256xf32> -> vector<8x256xf32>
    %c0_4 = arith.constant 0 : index
    %c0_5 = arith.constant 0 : index
    %c0_6 = arith.constant 0 : index
    %4 = vector.load %arg4[%c0_4, %c0_5, %c0_6] : memref<1x32x8xf32, #tpu.memory_space<vmem>>, vector<1x32x8xf32>
    %5 = vector.shape_cast %4 : vector<1x32x8xf32> to vector<32x8xf32>
    %6 = math.cos %3 : vector<8x256xf32>
    %cst_7 = arith.constant dense<0.000000e+00> : vector<32x256xf32>
    %7 = tpu.matmul %5, %6, %cst_7 {dimension_numbers = #tpu.dot_dimension_numbers<[1], [0], [0], [1], [0, 0, 1, 1], [], []>} : vector<32x8xf32>, vector<8x256xf32>, vector<32x256xf32> -> vector<32x256xf32>
    %c0_8 = arith.constant 0 : index
    %c0_9 = arith.constant 0 : index
    %c0_10 = arith.constant 0 : index
    %8 = vector.load %arg5[%c0_8, %c0_9, %c0_10] : memref<1x32x8xf32, #tpu.memory_space<vmem>>, vector<1x32x8xf32>
    %9 = vector.shape_cast %8 : vector<1x32x8xf32> to vector<32x8xf32>
    %10 = math.sin %3 : vector<8x256xf32>
    %cst_11 = arith.constant dense<0.000000e+00> : vector<32x256xf32>
    %11 = tpu.matmul %9, %10, %cst_11 {dimension_numbers = #tpu.dot_dimension_numbers<[1], [0], [0], [1], [0, 0, 1, 1], [], []>} : vector<32x8xf32>, vector<8x256xf32>, vector<32x256xf32> -> vector<32x256xf32>
    %12 = arith.addf %7, %11 : vector<32x256xf32>
    %c0_12 = arith.constant 0 : index
    %c0_13 = arith.constant 0 : index
    %c0_14 = arith.constant 0 : index
    %13 = vector.load %arg6[%c0_12, %c0_13, %c0_14] : memref<1x32x1xf32, #tpu.memory_space<vmem>>, vector<1x32x1xf32>
    %14 = vector.shape_cast %13 : vector<1x32x1xf32> to vector<32x1xf32>
    %15 = vector.broadcast %14 : vector<32x1xf32> to vector<32x256xf32>
    %16 = arith.addf %12, %15 : vector<32x256xf32>
    %cst_15 = arith.constant 0.000000e+00 : f32
    %17 = vector.broadcast %cst_15 : f32 to vector<32x256xf32>
    %18 = arith.maximumf %16, %17 : vector<32x256xf32>
    %c0_16 = arith.constant 0 : index
    %c0_17 = arith.constant 0 : index
    %c0_18 = arith.constant 0 : index
    %19 = vector.load %arg7[%c0_16, %c0_17, %c0_18] : memref<1x32x32xf32, #tpu.memory_space<vmem>>, vector<1x32x32xf32>
    %20 = vector.shape_cast %19 : vector<1x32x32xf32> to vector<32x32xf32>
    %cst_19 = arith.constant dense<0.000000e+00> : vector<32x256xf32>
    %21 = tpu.matmul %20, %18, %cst_19 {dimension_numbers = #tpu.dot_dimension_numbers<[1], [0], [0], [1], [0, 0, 1, 1], [], []>} : vector<32x32xf32>, vector<32x256xf32>, vector<32x256xf32> -> vector<32x256xf32>
    %c0_20 = arith.constant 0 : index
    %c0_21 = arith.constant 0 : index
    %c0_22 = arith.constant 0 : index
    %22 = vector.load %arg8[%c0_20, %c0_21, %c0_22] : memref<1x32x1xf32, #tpu.memory_space<vmem>>, vector<1x32x1xf32>
    %23 = vector.shape_cast %22 : vector<1x32x1xf32> to vector<32x1xf32>
    %24 = vector.broadcast %23 : vector<32x1xf32> to vector<32x256xf32>
    %25 = arith.addf %21, %24 : vector<32x256xf32>
    %cst_23 = arith.constant 0.000000e+00 : f32
    %26 = vector.broadcast %cst_23 : f32 to vector<32x256xf32>
    %27 = arith.maximumf %25, %26 : vector<32x256xf32>
    %c0_24 = arith.constant 0 : index
    %c0_25 = arith.constant 0 : index
    %c0_26 = arith.constant 0 : index
    %28 = vector.load %arg9[%c0_24, %c0_25, %c0_26] : memref<1x3x32xf32, #tpu.memory_space<vmem>>, vector<1x3x32xf32>
    %29 = vector.shape_cast %28 : vector<1x3x32xf32> to vector<3x32xf32>
    %cst_27 = arith.constant dense<0.000000e+00> : vector<3x256xf32>
    %30 = tpu.matmul %29, %27, %cst_27 {dimension_numbers = #tpu.dot_dimension_numbers<[1], [0], [0], [1], [0, 0, 1, 1], [], []>} : vector<3x32xf32>, vector<32x256xf32>, vector<3x256xf32> -> vector<3x256xf32>
    %c0_28 = arith.constant 0 : index
    %c0_29 = arith.constant 0 : index
    %c0_30 = arith.constant 0 : index
    %31 = vector.load %arg10[%c0_28, %c0_29, %c0_30] : memref<1x3x1xf32, #tpu.memory_space<vmem>>, vector<1x3x1xf32>
    %32 = vector.shape_cast %31 : vector<1x3x1xf32> to vector<3x1xf32>
    %33 = vector.broadcast %32 : vector<3x1xf32> to vector<3x256xf32>
    %34 = arith.addf %30, %33 : vector<3x256xf32>
    %cst_31 = arith.constant 5.000000e-01 : f32
    %35 = vector.broadcast %cst_31 : f32 to vector<3x256xf32>
    %36 = arith.addf %34, %35 : vector<3x256xf32>
    %c0_32 = arith.constant 0 : index
    %c0_33 = arith.constant 0 : index
    %c0_34 = arith.constant 0 : index
    %37 = vector.load %arg11[%c0_32, %c0_33, %c0_34] : memref<1x3x256xf32, #tpu.memory_space<vmem>>, vector<1x3x256xf32>
    %38 = vector.shape_cast %37 : vector<1x3x256xf32> to vector<3x256xf32>
    %39 = vector.shape_cast %36 : vector<3x256xf32> to vector<1x3x256xf32>
    tpu.vector_store %arg11[%c0_32, %c0_33, %c0_34], %39 {strides = array<i32>} : memref<1x3x256xf32, #tpu.memory_space<vmem>>, vector<1x3x256xf32>,
    return
  }
  func.func @transform_0(%arg0: i32, %arg1: i32) -> (i32, i32, i32) {
    %c0_i32 = arith.constant 0 : i32
    %c0_i32_0 = arith.constant 0 : i32
    return %arg0, %c0_i32, %arg1 : i32, i32, i32
  }
  func.func @transform_1(%arg0: i32, %arg1: i32) -> (i32, i32) {
    %c0_i32 = arith.constant 0 : i32
    %c0_i32_0 = arith.constant 0 : i32
    %c0_i32_1 = arith.constant 0 : i32
    return %c0_i32, %c0_i32_0 : i32, i32
  }
  func.func @transform_2(%arg0: i32, %arg1: i32) -> (i32, i32, i32) {
    %c0_i32 = arith.constant 0 : i32
    %c0_i32_0 = arith.constant 0 : i32
    %c0_i32_1 = arith.constant 0 : i32
    return %arg0, %c0_i32, %c0_i32_0 : i32, i32, i32
  }
  func.func @transform_3(%arg0: i32, %arg1: i32) -> (i32, i32, i32) {
    %c0_i32 = arith.constant 0 : i32
    %c0_i32_0 = arith.constant 0 : i32
    %c0_i32_1 = arith.constant 0 : i32
    return %arg0, %c0_i32, %c0_i32_0 : i32, i32, i32
  }
  func.func @transform_4(%arg0: i32, %arg1: i32) -> (i32, i32, i32) {
    %c0_i32 = arith.constant 0 : i32
    %c0_i32_0 = arith.constant 0 : i32
    %c0_i32_1 = arith.constant 0 : i32
    return %arg0, %c0_i32, %c0_i32_0 : i32, i32, i32
  }
  func.func @transform_5(%arg0: i32, %arg1: i32) -> (i32, i32, i32) {
    %c0_i32 = arith.constant 0 : i32
    %c0_i32_0 = arith.constant 0 : i32
    %c0_i32_1 = arith.constant 0 : i32
    return %arg0, %c0_i32, %c0_i32_0 : i32, i32, i32
  }
  func.func @transform_6(%arg0: i32, %arg1: i32) -> (i32, i32, i32) {
    %c0_i32 = arith.constant 0 : i32
    %c0_i32_0 = arith.constant 0 : i32
    %c0_i32_1 = arith.constant 0 : i32
    return %arg0, %c0_i32, %c0_i32_0 : i32, i32, i32
  }
  func.func @transform_7(%arg0: i32, %arg1: i32) -> (i32, i32, i32) {
    %c0_i32 = arith.constant 0 : i32
    %c0_i32_0 = arith.constant 0 : i32
    %c0_i32_1 = arith.constant 0 : i32
    return %arg0, %c0_i32, %c0_i32_0 : i32, i32, i32
  }
  func.func @transform_8(%arg0: i32, %arg1: i32) -> (i32, i32, i32) {
    %c0_i32 = arith.constant 0 : i32
    %c0_i32_0 = arith.constant 0 : i32
    %c0_i32_1 = arith.constant 0 : i32
    return %arg0, %c0_i32, %c0_i32_0 : i32, i32, i32
  }
  func.func @transform_9(%arg0: i32, %arg1: i32) -> (i32, i32, i32) {
    %c0_i32 = arith.constant 0 : i32
    %c0_i32_0 = arith.constant 0 : i32
    return %arg0, %c0_i32, %arg1 : i32, i32, i32
  }
}

</mosaic_0001>

<bundles_post_ra>
// kernel: tpu_custom_call.1
= control target key start
LH: loop header
LB: loop body
LE: loop exit
PB: predicated region body
PF: predicated region fallthrough
CT: control target
= control target key end

     0   :  { %s1894_s30 = smov 0   ;;  %s1896_s10 = smov 0   ;;  %s2200_s0 = inlined_call_operand.vmem [shape: f32[2,2,256], index: 0, kind: input, shape index: {}]   ;;  %s2201_s1 = inlined_call_operand.vmem [shape: f32[8,2], index: 1, kind: input, shape index: {}]   ;;  %s2202_s2 = inlined_call_operand.vmem [shape: f32[2,32,8], index: 2, kind: input, shape index: {}]   ;;  %s2203_s3 = inlined_call_operand.vmem [shape: f32[2,32,8], index: 3, kind: input, shape index: {}]   ;;  %s2204_s4 = inlined_call_operand.vmem [shape: f32[2,32,1], index: 4, kind: input, shape index: {}]   ;;  %s2205_s5 = inlined_call_operand.vmem [shape: f32[2,32,32], index: 5, kind: input, shape index: {}]   ;;  %s2206_s6 = inlined_call_operand.vmem [shape: f32[2,32,1], index: 6, kind: input, shape index: {}]   ;;  %s2207_s7 = inlined_call_operand.vmem [shape: f32[2,3,32], index: 7, kind: input, shape index: {}]   ;;  %s2208_s8 = inlined_call_operand.vmem [shape: f32[2,3,1], index: 8, kind: input, shape index: {}]   ;;  %s2209_s9 = inlined_call_operand.vmem [shape: f32[2,3,256], index: 9, kind: output, shape index: {}]  }
   0x1   :  { %s1898_s11 = smov 0  }
   0x2 LB: > { %s31_s12 = sadd.s32 1, %s1831_s10  ;;  %p1709_p0 = scmp.ge.s32.totalorder %s1835_s11, 1  ;;  %s1835_s11 = sphi %s1898_s11, %s19_s11   ;;  %s1831_s10 = sphi %s1896_s10, %s2213_s10   ;;  %s1827_s30 = sphi %s1894_s30, %s2212_s30  }
   0x3   : > { %p33_p1 = scmp.ge.s32.totalorder %s31_s12, 2  ;;  %p376_p2 = scmp.lt.s32.totalorder %s1835_s11, 3 }
   0x5   : > { %s2215_s12 = smov (%p33_p1, %s31_s12), 0  ;;  %p377_p3 = pnand %p1709_p0, %p376_p2 }
   0x6   : > { %p454_p4 = scmp.lt.s32.totalorder (!%p377_p3), %s1827_s30, 1 }
   0x7   : > { %380 = sbr.rel (%p377_p3) target bundleno = 737 (0x2e1), region = 56 }
   0xc   : > { %s2217_s30 = smov (!%p454_p4, %s1827_s30), 1  ;;  %vm516_vm0 = vcmask 1041408   ;;  %v507_v1 = vld [vmem:[%s2201_s1] sm:$0xff]  ;;  %vm512_vm1 = vcmask 15360   ;;  %v1837_v4 = vmov 0  }
   0xd   : > { %s1915_s13 = sshll.u32 %s2217_s30, 2  ;;  %1811 = vset.pattern.permute.xlu1 %v1837_v4  ;;  %1810 = vset.pattern.permute.xlu0 %v1837_v4  ;;  %v1838_v27 = vmov 683565275   ;;  %v1839_v29 = vmov 2475754826   ;;  %s2076_s19 = sshll.u32 %s2217_s30, 5 }
   0xe   : > { %s461_s16 = scalar_lea.vmem %s2200_s0, %s1915_s13  ;;  %1812 = vset.pattern.permute.xlu2 %v1837_v4  ;;  %v1840_v31 = vmov 2131351028   ;;  %v1841_v34 = vmov 2102212464   ;;  %v1842_v36 = vmov 920167782   ;;  %s2082_s22 = scalar_lea.vmem %s2204_s4, %s2076_s19 }
   0xf   : > { %v506_v0 = vld [vmem:[%s461_s16] sm:$0xf]  ;;  %v1843_v43 = vmov 1326507024   ;;  %s2103_s25 = scalar_lea.vmem %s2203_s3, %s2076_s19  ;;  %s2125_s28 = scalar_lea.vmem %s2202_s2, %s2076_s19 }
  0x10   : > { %509 = vst [vmem:[#allocation1] ss:$4 sm:$0xff] %v506_v0  ;;  %s2137_s15 = scalar_lea.vmem %s2206_s6, %s2076_s19  ;;  %s2161_s18 = scalar_lea.vmem %s2205_s5, %s2076_s19 }
  0x11   : > { %s495_s21 = scalar_lea.vmem %s2208_s8, %s1915_s13  ;;  %s491_s24 = scalar_lea.vmem %s2207_s7, %s1915_s13 }
  0x12   : > { %s1776_s13 = sshll.u32 %s2217_s30, 3 }
  0x13   : > { %s504_s27 = scalar_lea.vmem %s2209_s9, %s1776_s13 }
  0x17   : > { %v510_v2 = vld.sshfl [vmem:[#allocation1] sm:$0xff pattern:$0x73625140]  ;;  %v511_v3 = vld.sshfl [vmem:[#allocation1 + $0x8] sm:$0xff pattern:$0x73625140] }
  0x18   : > { %1726 = vmatpush.msk.msra.mxu0 %vm516_vm0, %v510_v2  ;;  %1728 = vmatpush.msk.msra.mxu1 %vm516_vm0, %v511_v3 }
  0x19   : > { %1727 = vmatmul.msk.f32.vlgmr.msra.gmra.mxu0 %vm512_vm1, %v507_v1  ;;  %1729 = vmatmul.msk.f32.vlgmr.msra.gmra.mxu1 %vm512_vm1, %v507_v1 }
  0x96   : > { %v1927_v5 = vpop.f32.mrf.mxu0  ;;  %v1929_v6 = vpop.f32.mrf.mxu1 }
  0x97   : > { %v565_v7 = vand.u32 2147483647, %v1927_v5  ;;  %v568_v8 = vand.u32 2139095040, %v1927_v5  ;;  %v722_v9 = vand.u32 2139095040, %v1929_v6  ;;  %v719_v11 = vand.u32 2147483647, %v1929_v6 }
  0x99   : > { %v569_v10 = vshrl.u32 %v568_v8, 23  ;;  %v572_v12 = vand.u32 8388607, %v565_v7  ;;  %v723_v13 = vshrl.u32 %v722_v9, 23  ;;  %v726_v17 = vand.u32 8388607, %v719_v11 }
  0x9b   : > { %v1730_v14 = vadd.s32 4294967169, %v569_v10  ;;  %v1733_v15 = vadd.s32 4294967169, %v723_v13  ;;  %v573_v18 = vor.u32 8388608, %v572_v12  ;;  %v727_v22 = vor.u32 8388608, %v726_v17 }
  0x9d   : > { %v575_v16 = vadd.s32 1, %v1730_v14  ;;  %v729_v19 = vadd.s32 1, %v1733_v15  ;;  %v1939_v24 = vshll.u32 %v573_v18, 8  ;;  %v1949_v41 = vshll.u32 %v727_v22, 8 }
  0x9f   : > { %vm576_vm2 = vcmp.gt.s32.totalorder %v575_v16, 0  ;;  %vm730_vm3 = vcmp.gt.s32.totalorder %v729_v19, 0  ;;  %v614_v45 = vand.u32 65535, %v1939_v24  ;;  %v615_v46 = vshrl.u32 %v1939_v24, 16 }
  0xa0   : > { %v577_v20 = vsel %vm576_vm2, %v575_v16, 0  ;;  %v731_v23 = vsel %vm730_vm3, %v729_v19, 0 }
  0xa1   : > { %v579_v21 = vand.u32 31, %v577_v20  ;;  %v1941_v25 = vand.u32 31, %v731_v23  ;;  %v1944_v33 = vshrl.u32 %v577_v20, 5  ;;  %v1984_v14 = vshrl.u32 %v731_v23, 5 }
  0xa3   : > { %v580_v26 = vsub.s32 32, %v579_v21  ;;  %v582_v28 = vshll.u32 %v1838_v27, %v579_v21  ;;  %v585_v30 = vshll.u32 %v1839_v29, %v579_v21  ;;  %v588_v32 = vshll.u32 %v1840_v31, %v579_v21 }
  0xa4   : > { %v591_v35 = vshll.u32 %v1841_v34, %v579_v21  ;;  %v594_v37 = vshll.u32 %v1842_v36, %v579_v21  ;;  %v1956_v50 = vsub.s32 32, %v1941_v25  ;;  %vm597_vm4 = vcmp.lt.s32.totalorder %v1944_v33, 1 }
  0xa5   : > { %v583_v38 = vshrl.u32 %v1839_v29, %v580_v26  ;;  %v586_v39 = vshrl.u32 %v1840_v31, %v580_v26  ;;  %v589_v40 = vshrl.u32 %v1841_v34, %v580_v26  ;;  %v592_v42 = vshrl.u32 %v1842_v36, %v580_v26 }
  0xa6   : > { %v595_v44 = vshrl.u32 %v1843_v43, %v580_v26  ;;  %vm598_vm5 = vcmp.lt.s32.totalorder %v1944_v33, 2  ;;  %v581_v53 = vshrl.u32 %v1838_v27, %v580_v26  ;;  %vm600_vm6 = vcmp.lt.s32.totalorder %v1944_v33, 4 }
  0xa7   : > { %v584_v47 = vor.u32 %v583_v38, %v582_v28  ;;  %v587_v48 = vor.u32 %v586_v39, %v585_v30  ;;  %v590_v49 = vor.u32 %v589_v40, %v588_v32  ;;  %v593_v51 = vor.u32 %v592_v42, %v591_v35 }
  0xa8   : > { %v596_v52 = vor.u32 %v595_v44, %v594_v37  ;;  %vm599_vm7 = vcmp.lt.s32.totalorder %v1944_v33, 3  ;;  %v736_v58 = vshll.u32 %v1838_v27, %v1941_v25  ;;  %v737_v62 = vshrl.u32 %v1839_v29, %v1956_v50 }
  0xa9   : > { %v605_v54 = vsel %vm597_vm4, %v584_v47, %v587_v48  ;;  %v609_v55 = vsel %vm597_vm4, %v587_v48, %v590_v49  ;;  %v606_v56 = vsel %vm600_vm6, %v593_v51, 920167782  ;;  %v602_v59 = vsel %vm600_vm6, %v590_v49, 2102212464 }
  0xaa   : > { %v610_v57 = vsel %vm600_vm6, %v596_v52, 1326507024  ;;  %v607_v60 = vsel %vm599_vm7, %v590_v49, %v606_v56  ;;  %v739_v1 = vshll.u32 %v1839_v29, %v1941_v25  ;;  %v740_v2 = vshrl.u32 %v1840_v31, %v1956_v50 }
  0xab   : > { %v611_v61 = vsel %vm599_vm7, %v593_v51, %v610_v57  ;;  %v608_v63 = vsel %vm598_vm5, %v605_v54, %v607_v60  ;;  %v601_v12 = vsel %vm597_vm4, %v581_v53, %v584_v47  ;;  %v603_v13 = vsel %vm599_vm7, %v587_v48, %v602_v59 }
  0xac   : > { %v612_v0 = vsel %vm598_vm5, %v609_v55, %v611_v61  ;;  %v638_v9 = vand.u32 65535, %v608_v63  ;;  %v639_v10 = vshrl.u32 %v608_v63, 16  ;;  %v1986_v15 = vor.u32 %v737_v62, %v736_v58 }
  0xad   : > { %v616_v3 = vand.u32 65535, %v612_v0  ;;  %v617_v8 = vshrl.u32 %v612_v0, 16  ;;  %v1988_v18 = vor.u32 %v740_v2, %v739_v1  ;;  %v743_v19 = vshrl.u32 %v1841_v34, %v1956_v50 }
  0xae   : > { %v641_v21 = vmul.u32 %v639_v10, %v614_v45  ;;  %v642_v22 = vmul.u32 %v638_v9, %v615_v46  ;;  %v742_v26 = vshll.u32 %v1840_v31, %v1941_v25  ;;  %v640_v30 = vmul.u32 %v638_v9, %v614_v45 }
  0xaf   : > { %v619_v16 = vmul.u32 %v617_v8, %v614_v45  ;;  %v620_v17 = vmul.u32 %v616_v3, %v615_v46  ;;  %v618_v20 = vmul.u32 %v616_v3, %v614_v45  ;;  %v621_v28 = vmul.u32 %v617_v8, %v615_v46 }
  0xb0   : > { %v643_v32 = vmul.u32 %v639_v10, %v615_v46  ;;  %v644_v38 = vshll.u32 %v641_v21, 16  ;;  %v646_v40 = vshll.u32 %v642_v22, 16  ;;  %v1993_v42 = vor.u32 %v743_v19, %v742_v26 }
  0xb1   : > { %v622_v29 = vshll.u32 %v619_v16, 16  ;;  %v623_v23 = vshrl.u32 %v619_v16, 16  ;;  %v624_v35 = vshll.u32 %v620_v17, 16  ;;  %v625_v37 = vshrl.u32 %v620_v17, 16 }
  0xb2   : > { %vm648_vm9 = vc.u32 %v640_v30, %v644_v38  ;;  %v650_v47 = vadd.s32 %v644_v38, %v640_v30  ;;  %v746_v31 = vshrl.u32 %v1842_v36, %v1956_v50  ;;  %v745_v46 = vshll.u32 %v1841_v34, %v1941_v25 }
  0xb3   : > { %vm626_vm8 = vc.u32 %v618_v20, %v622_v29  ;;  %v628_v39 = vadd.s32 %v622_v29, %v618_v20  ;;  %v649_v45 = vsel %vm648_vm9, 1, %v1837_v4  ;;  %v748_v52 = vshll.u32 %v1842_v36, %v1941_v25 }
  0xb4   : > { %v627_v44 = vsel %vm626_vm8, 1, %v1837_v4  ;;  %v651_v51 = vadd.s32 %v649_v45, %v643_v32  ;;  %vm652_vm11 = vc.u32 %v650_v47, %v646_v40  ;;  %v747_v55 = vor.u32 %v746_v31, %v745_v46 }
  0xb5   : > { %v629_v48 = vadd.s32 %v627_v44, %v621_v28  ;;  %vm630_vm10 = vc.u32 %v628_v39, %v624_v35  ;;  %v653_v54 = vsel %vm652_vm11, 1, %v1837_v4  ;;  %v749_v56 = vshrl.u32 %v1843_v43, %v1956_v50 }
  0xb6   : > { %v631_v49 = vsel %vm630_vm10, 1, %v1837_v4  ;;  %v645_v57 = vshrl.u32 %v641_v21, 16  ;;  %v647_v58 = vshrl.u32 %v642_v22, 16  ;;  %v2007_v59 = vadd.s32 %v650_v47, %v646_v40 }
  0xb7   : > { %v633_v53 = vadd.s32 %v631_v49, %v629_v48  ;;  %v655_v60 = vadd.s32 %v653_v54, %v651_v51  ;;  %v750_v61 = vor.u32 %v749_v56, %v748_v52  ;;  %vm751_vm12 = vcmp.lt.s32.totalorder %v1984_v14, 1 }
  0xb8   : > { %vm754_vm13 = vcmp.lt.s32.totalorder %v1984_v14, 4  ;;  %vm753_vm14 = vcmp.lt.s32.totalorder %v1984_v14, 3  ;;  %v759_v25 = vsel %vm751_vm12, %v1986_v15, %v1988_v18  ;;  %vm752_vm15 = vcmp.lt.s32.totalorder %v1984_v14, 2 }
  0xb9   : > { %v634_v34 = vadd.s32 %v633_v53, %v623_v23  ;;  %v656_v62 = vadd.s32 %v655_v60, %v645_v57  ;;  %v760_v36 = vsel %vm754_vm13, %v747_v55, 920167782  ;;  %v763_v0 = vsel %vm751_vm12, %v1988_v18, %v1993_v42 }
  0xba   : > { %v761_v63 = vsel %vm753_vm14, %v1993_v42, %v760_v36  ;;  %v604_v1 = vsel %vm598_vm5, %v601_v12, %v603_v13  ;;  %v764_v8 = vsel %vm754_vm13, %v750_v61, 1326507024  ;;  %v768_v10 = vand.u32 65535, %v1949_v41 }
  0xbb   : > { %v2018_v43 = vadd.s32 %v634_v34, %v625_v37  ;;  %v657_v2 = vadd.s32 %v656_v62, %v647_v58  ;;  %v762_v3 = vsel %vm752_vm15, %v759_v25, %v761_v63  ;;  %v765_v9 = vsel %vm753_vm14, %v747_v55, %v764_v8 }
  0xbc   : > { %v792_v16 = vand.u32 65535, %v762_v3  ;;  %v766_v33 = vsel %vm752_vm15, %v763_v0, %v765_v9  ;;  %v769_v12 = vshrl.u32 %v1949_v41, 16  ;;  %v793_v13 = vshrl.u32 %v762_v3, 16 }
  0xbd   : > { %vm660_vm0 = vc.u32 %v2018_v43, %v2007_v59  ;;  %v661_v17 = vadd.s32 1, %v657_v2  ;;  %v658_v19 = vmul.u32 %v1939_v24, %v604_v1  ;;  %v770_v20 = vand.u32 65535, %v766_v33 }
  0xbe   : > { %v771_v21 = vshrl.u32 %v766_v33, 16  ;;  %v795_v26 = vmul.u32 %v793_v13, %v768_v10  ;;  %v796_v28 = vmul.u32 %v792_v16, %v769_v12  ;;  %v735_v23 = vshrl.u32 %v1838_v27, %v1956_v50 }
  0xbf   : > { %v662_v22 = vsel %vm660_vm0, %v661_v17, %v657_v2  ;;  %v774_v32 = vmul.u32 %v770_v20, %v769_v12  ;;  %v794_v35 = vmul.u32 %v792_v16, %v768_v10  ;;  %v797_v37 = vmul.u32 %v793_v13, %v769_v12 }
  0xc0   : > { %v663_v29 = vadd.s32 %v662_v22, %v658_v19  ;;  %v773_v30 = vmul.u32 %v771_v21, %v768_v10  ;;  %v798_v38 = vshll.u32 %v795_v26, 16  ;;  %v772_v40 = vmul.u32 %v770_v20, %v768_v10 }
  0xc1   : > { %v775_v44 = vmul.u32 %v771_v21, %v769_v12  ;;  %v778_v31 = vshll.u32 %v774_v32, 16  ;;  %v800_v24 = vshll.u32 %v796_v28, 16  ;;  %v756_v27 = vsel %vm754_vm13, %v1993_v42, 2102212464 }
  0xc2   : > { %v664_v39 = vadd.s32 536870912, %v663_v29  ;;  %v776_v47 = vshll.u32 %v773_v30, 16  ;;  %vm802_vm1 = vc.u32 %v794_v35, %v798_v38  ;;  %v804_v48 = vadd.s32 %v798_v38, %v794_v35 }
  0xc3   : > { %v803_v49 = vsel %vm802_vm1, 1, %v1837_v4  ;;  %v755_v55 = vsel %vm751_vm12, %v735_v23, %v1986_v15  ;;  %v799_v57 = vshrl.u32 %v795_v26, 16  ;;  %v757_v42 = vsel %vm753_vm14, %v1988_v18, %v756_v27 }
  0xc4   : > { %v2045_v45 = vshrl.u32 %v664_v39, 30  ;;  %vm780_vm2 = vc.u32 %v772_v40, %v776_v47  ;;  %v782_v46 = vadd.s32 %v776_v47, %v772_v40  ;;  %v805_v51 = vadd.s32 %v803_v49, %v797_v37 }
  0xc5   : > { %v781_v50 = vsel %vm780_vm2, 1, %v1837_v4  ;;  %vm806_vm3 = vc.u32 %v804_v48, %v800_v24  ;;  %v777_v34 = vshrl.u32 %v773_v30, 16  ;;  %v801_v62 = vshrl.u32 %v796_v28, 16 }
  0xc6   : > { %v666_v52 = vshll.u32 %v2045_v45, 30  ;;  %v783_v53 = vadd.s32 %v781_v50, %v775_v44  ;;  %vm784_vm4 = vc.u32 %v782_v46, %v778_v31  ;;  %v807_v54 = vsel %vm806_vm3, 1, %v1837_v4 }
  0xc7   : > { %v785_v56 = vsel %vm784_vm4, 1, %v1837_v4  ;;  %v809_v58 = vadd.s32 %v807_v54, %v805_v51  ;;  %v779_v63 = vshrl.u32 %v774_v32, 16  ;;  %v758_v15 = vsel %vm752_vm15, %v755_v55, %v757_v42 }
  0xc8   : > { %v667_v60 = vsub.s32 %v663_v29, %v666_v52  ;;  %v787_v61 = vadd.s32 %v785_v56, %v783_v53  ;;  %v808_v3 = vadd.s32 %v804_v48, %v800_v24  ;;  %v812_v10 = vmul.u32 %v1949_v41, %v758_v15 }
  0xc9   : > { %v810_v25 = vadd.s32 %v809_v58, %v799_v57  ;;  %v659_v13 = vadd.s32 %v2007_v59, %v2018_v43  ;;  %v689_v43 = vsub.s32 4, %v2045_v45  ;;  %vm567_vm9 = vcmp.lt.s32.totalorder %v1927_v5, 0 }
  0xca   : > { %vm668_vm5 = vcmp.lt.s32.totalorder %v667_v60, 0  ;;  %v669_v36 = vsub.s32 0, %v667_v60  ;;  %v788_v0 = vadd.s32 %v787_v61, %v777_v34  ;;  %vm566_vm10 = vcmp.le.f32.partialorder %v565_v7, 0.7853982 }
  0xcb   : > { %v811_v1 = vadd.s32 %v810_v25, %v801_v62  ;;  %v690_v48 = vsel %vm567_vm9, %v689_v43, %v2045_v45  ;;  %vm721_vm12 = vcmp.lt.s32.totalorder %v1929_v6, 0  ;;  %vm708_vm13 = vweird.f32 %v1927_v5 }
  0xcc   : > { %v670_v4 = vsel %vm668_vm5, %v669_v36, %v667_v60  ;;  %v789_v2 = vadd.s32 %v788_v0, %v779_v63  ;;  %v692_v56 = vsel %vm566_vm10, 0, %v690_v48  ;;  %vm2088_vm14 = vcmp.le.f32.partialorder %v719_v11, 0.7853982 }
  0xcd   : > { %v671_v8 = vclz %v670_v4  ;;  %v815_v9 = vadd.s32 1, %v811_v1  ;;  %v1021_v62 = vadd.s32 3, %v692_v56  ;;  %v709_v4 = vand.u32 3, %v692_v56  ;;  %v1330_v56 = vld [vmem:[%s2082_s22 + $0x10] sm:$0xff] }
  0xce   : > { %vm814_vm6 = vc.u32 %v789_v2, %v808_v3  ;;  %v813_v49 = vadd.s32 %v808_v3, %v789_v2  ;;  %vm1187_vm5 = vcmask 64512  }
  0xcf   : > { %v1731_v18 = vadd.s32 4294967294, %v671_v8  ;;  %v816_v16 = vsel %vm814_vm6, %v815_v9, %v811_v1  ;;  %v1022_v9 = vand.u32 3, %v1021_v62  ;;  %vm710_vm15 = vcmp.lt.s32.totalorder %v709_v4, 2 }
  0xd0   : > { %v817_v17 = vadd.s32 %v816_v16, %v812_v10  ;;  %vm711_vm0 = vcmp.eq.s32.totalorder %v709_v4, 0  ;;  %vm714_vm1 = vcmp.eq.s32.totalorder %v709_v4, 2 }
  0xd1   : > { %vm1732_vm7 = vcmp.lt.s32.totalorder %v1731_v18, 0  ;;  %vm1027_vm2 = vcmp.eq.s32.totalorder %v1022_v9, 2  ;;  %vm1023_vm3 = vcmp.lt.s32.totalorder %v1022_v9, 2  ;;  %vm1024_vm4 = vcmp.eq.s32.totalorder %v1022_v9, 0 }
  0xd2   : > { %v674_v33 = vsel %vm1732_vm7, 0, %v1731_v18  ;;  %v818_v12 = vadd.s32 536870912, %v817_v17 }
  0xd3   : > { %v675_v14 = vsub.s32 32, %v674_v33  ;;  %v679_v19 = vsub.s32 4294967266, %v674_v33  ;;  %v676_v21 = vshll.u32 %v667_v60, %v674_v33  ;;  %v1329_v33 = vld [vmem:[%s2082_s22 + $0x8] sm:$0xff] }
  0xd4   : > { %v2066_v20 = vshrl.u32 %v818_v12, 30  ;;  %1339 = vperm.xlu1 %1811, %v1329_v33  }
  0xd5   : > { %v677_v22 = vshrl.u32 %v659_v13, %v675_v14  ;;  %v680_v26 = vadd.s32 127, %v679_v19 }
  0xd6   : > { %v820_v28 = vshll.u32 %v2066_v20, 30  ;;  %v843_v13 = vsub.s32 4, %v2066_v20 }
  0xd7   : > { %v678_v41 = vor.u32 %v677_v22, %v676_v21  ;;  %v681_v29 = vshll.u32 %v680_v26, 23 }
  0xd8   : > { %v821_v30 = vsub.s32 %v817_v17, %v820_v28 }
  0xd9   : > { %v682_v32 = vor.u32 4788187, %v681_v29  ;;  %v685_v37 = vcvt.s32.f32 %v678_v41 }
  0xda   : > { %vm822_vm8 = vcmp.lt.s32.totalorder %v821_v30, 0  ;;  %v823_v23 = vsub.s32 0, %v821_v30 }
  0xdb   : > { %v683_v35 = vand.u32 2147483647, %v682_v32  ;;  %v844_v32 = vsel %vm721_vm12, %v843_v13, %v2066_v20 }
  0xdc   : > { %v824_v38 = vsel %vm822_vm8, %v823_v23, %v821_v30  ;;  %v873_v23 = vld [vmem:[%s2103_s25] sm:$0xff]  ;;  %v846_v43 = vsel %vm2088_vm14, 0, %v844_v32 }
  0xdd   : > { %v686_v39 = vmul.f32 %v685_v37, %v683_v35  ;;  %v825_v59 = vclz %v824_v38  ;;  %v874_v35 = vld [vmem:[%s2103_s25 + $0x8] sm:$0xff] }
  0xdf   : > { %v687_v40 = vxor.u32 2147483648, %v686_v39  ;;  %v1734_v44 = vadd.s32 4294967294, %v825_v59 }
  0xe1   : > { %v688_v47 = vsel %vm567_vm9, %v687_v40, %v686_v39  ;;  %vm1735_vm11 = vcmp.lt.s32.totalorder %v1734_v44, 0 }
  0xe2   : > { %v691_v31 = vsel %vm566_vm10, %v1927_v5, %v688_v47  ;;  %v828_v24 = vsel %vm1735_vm11, 0, %v1734_v44  ;;  %v1328_v44 = vld [vmem:[%s2082_s22] sm:$0xff]  ;;  %v1331_v47 = vld [vmem:[%s2082_s22 + $0x18] sm:$0xff] }
  0xe3   : > { %v693_v46 = vmul.f32 %v691_v31, %v691_v31  ;;  %v829_v27 = vsub.s32 32, %v828_v24  ;;  %v833_v50 = vsub.s32 4294967266, %v828_v24  ;;  %v830_v51 = vshll.u32 %v821_v30, %v828_v24  ;;  %1334 = vperm.xlu1 %1811, %v1328_v44   ;;  %1349 = vperm.xlu0 %1810, %v1331_v47  }
  0xe4   : > { %v1176_v24 = vadd.s32 3, %v846_v43 }
  0xe5   : > { %v831_v52 = vshrl.u32 %v813_v49, %v829_v27  ;;  %v834_v53 = vadd.s32 127, %v833_v50  ;;  %v694_v54 = vmul.f32 -0.001358992, %v693_v46  ;;  %v701_v55 = vmul.f32 -0.00019511016, %v693_v46  ;;  %v561_v49 = vld [vmem:[%s2125_s28] sm:$0xff] }
  0xe6   : > { %v875_v27 = vld [vmem:[%s2103_s25 + $0x10] sm:$0xff] }
  0xe7   : > { %v832_v57 = vor.u32 %v831_v52, %v830_v51  ;;  %v835_v7 = vshll.u32 %v834_v53, 23  ;;  %v695_v58 = vadd.f32 0.041655596, %v694_v54  ;;  %v702_v60 = vadd.f32 0.008332121, %v701_v55 }
  0xe8   : > { %v863_v52 = vand.u32 3, %v846_v43  ;;  %v1177_v53 = vand.u32 3, %v1176_v24  ;;  %v1368_v43 = vld [vmem:[%s2161_s18] sm:$0xff] }
  0xe9   : > { %v836_v42 = vor.u32 4788187, %v835_v7  ;;  %v696_v34 = vmul.f32 %v695_v58, %v693_v46  ;;  %v703_v61 = vmul.f32 %v702_v60, %v693_v46  ;;  %v839_v25 = vcvt.s32.f32 %v832_v57 }
  0xea   : > { %vm864_vm6 = vcmp.lt.s32.totalorder %v863_v52, 2  ;;  %vm865_vm7 = vcmp.eq.s32.totalorder %v863_v52, 0  ;;  %vm868_vm8 = vcmp.eq.s32.totalorder %v863_v52, 2  ;;  %vm1178_vm9 = vcmp.lt.s32.totalorder %v1177_v53, 2 }
  0xeb   : > { %v837_v45 = vand.u32 2147483647, %v836_v42  ;;  %v697_v36 = vadd.f32 -0.4999988, %v696_v34  ;;  %v704_v63 = vadd.f32 -0.16666654, %v703_v61  ;;  %1344 = vperm.xlu0 %1810, %v1330_v56  }
  0xec   : > { %vm1179_vm10 = vcmp.eq.s32.totalorder %v1177_v53, 0  ;;  %vm1182_vm11 = vcmp.eq.s32.totalorder %v1177_v53, 2  ;;  %v1374_v56 = vld [vmem:[%s2137_s15 + $0x10] sm:$0xff] }
  0xed   : > { %v840_v0 = vmul.f32 %v839_v25, %v837_v45  ;;  %v698_v15 = vmul.f32 %v697_v36, %v693_v46  ;;  %v705_v1 = vmul.f32 %v704_v63, %v693_v46  ;;  %v562_v25 = vld [vmem:[%s2125_s28 + $0x8] sm:$0xff]  ;;  %v876_v36 = vld [vmem:[%s2103_s25 + $0x18] sm:$0xff]  ;;  %v1372_v63 = vld [vmem:[%s2137_s15] sm:$0xff] }
  0xee   : > { %1378 = vperm.xlu1 %1811, %v1372_v63  }
  0xef   : > { %v841_v2 = vxor.u32 2147483648, %v840_v0  ;;  %v699_v3 = vadd.f32 1.0, %v698_v15  ;;  %v706_v8 = vadd.f32 1.0, %v705_v1  ;;  %v564_v15 = vld [vmem:[%s2125_s28 + $0x18] sm:$0xff] }
  0xf1   : > { %v842_v18 = vsel %vm721_vm12, %v841_v2, %v840_v0  ;;  %v707_v16 = vmul.f32 %v706_v8, %v691_v31  ;;  %v715_v17 = vxor.u32 2147483648, %v699_v3  ;;  %vm862_vm12 = vweird.f32 %v1929_v6  ;;  %v563_v0 = vld [vmem:[%s2125_s28 + $0x10] sm:$0xff] }
  0xf2   : > { %v845_v12 = vsel %vm2088_vm14, %v1929_v6, %v842_v18  ;;  %v1373_v6 = vld [vmem:[%s2137_s15 + $0x8] sm:$0xff]  ;;  %vm1530_vm14 = vcmask 1043456  }
  0xf3   : > { %v847_v14 = vmul.f32 %v845_v12, %v845_v12  ;;  %v712_v11 = vxor.u32 2147483648, %v707_v16  ;;  %v716_v19 = vsel %vm714_vm1, %v715_v17, %v707_v16  ;;  %v1029_v21 = vsel %vm1027_vm2, %v715_v17, %v707_v16  ;;  %1383 = vperm.xlu0 %1810, %v1373_v6  }
  0xf5   : > { %v713_v22 = vsel %vm711_vm0, %v699_v3, %v712_v11  ;;  %v1026_v26 = vsel %vm1024_vm4, %v699_v3, %v712_v11  ;;  %v848_v28 = vmul.f32 -0.001358992, %v847_v14  ;;  %v855_v41 = vmul.f32 -0.00019511016, %v847_v14 }
  0xf6   : > { %v717_v29 = vsel %vm710_vm15, %v713_v22, %v716_v19  ;;  %v1030_v30 = vsel %vm1023_vm3, %v1026_v26, %v1029_v21 }
  0xf7   : > { %v718_v37 = vsel %vm708_vm13, nan, %v717_v29  ;;  %v1031_v38 = vsel %vm708_vm13, nan, %v1030_v30  ;;  %v849_v39 = vadd.f32 0.041655596, %v848_v28  ;;  %v856_v59 = vadd.f32 0.008332121, %v855_v41 }
  0xf8   : > { %1215 = vmatpush.msrb.mxu0 %v1031_v38  ;;  %1777 = vmatpush.msra.mxu2 %v1031_v38  ;;  %vm1396_vm13 = vcmask 261120  }
  0xf9   : > { %v850_v40 = vmul.f32 %v849_v39, %v847_v14  ;;  %v857_v20 = vmul.f32 %v856_v59, %v847_v14  ;;  %1742 = vmatmul.msk.f32.vlgmr.msrb.gmra.mxu0 %vm1187_vm5, %v873_v23  ;;  %1743 = vmatmul.msk.f32.vlgmr.msra.gmra.mxu2 %vm1187_vm5, %v874_v35 }
  0xfa   : > { %1285 = vmatpush.msra.mxu0 %v718_v37 }
  0xfb   : > { %v851_v5 = vadd.f32 -0.4999988, %v850_v40  ;;  %v858_v31 = vadd.f32 -0.16666654, %v857_v20 }
  0xfd   : > { %v852_v48 = vmul.f32 %v851_v5, %v847_v14  ;;  %v859_v46 = vmul.f32 %v858_v31, %v847_v14 }
  0xff   : > { %v853_v50 = vadd.f32 1.0, %v852_v48  ;;  %v860_v51 = vadd.f32 1.0, %v859_v46  ;;  %v1369_v46 = vld [vmem:[%s2161_s18 + $0x8] sm:$0xff] }
 0x101   : > { %v861_v54 = vmul.f32 %v860_v51, %v845_v12  ;;  %v869_v55 = vxor.u32 2147483648, %v853_v50  ;;  %1750 = vmatmul.msk.f32.vlgmr.msra.gmra.mxu0 %vm1187_vm5, %v561_v49  ;;  %1744 = vmatmul.msk.f32.gmra.mxu2 %vm1187_vm5, %v875_v27 }
 0x103   : > { %v866_v57 = vxor.u32 2147483648, %v861_v54  ;;  %v870_v58 = vsel %vm868_vm8, %v869_v55, %v861_v54  ;;  %v1184_v42 = vsel %vm1182_vm11, %v869_v55, %v861_v54  ;;  %v1370_v55 = vld [vmem:[%s2161_s18 + $0x10] sm:$0xff] }
 0x105   : > { %v867_v7 = vsel %vm865_vm7, %v853_v50, %v866_v57  ;;  %v1181_v60 = vsel %vm1179_vm10, %v853_v50, %v866_v57  ;;  %v1375_v50 = vld [vmem:[%s2137_s15 + $0x18] sm:$0xff] }
 0x106   : > { %v871_v34 = vsel %vm864_vm6, %v867_v7, %v870_v58  ;;  %v1185_v61 = vsel %vm1178_vm9, %v1181_v60, %v1184_v42  ;;  %1393 = vperm.xlu2 %1812, %v1375_v50   ;;  %v1371_v57 = vld [vmem:[%s2161_s18 + $0x18] sm:$0xff]  ;;  %v1476_v7 = vld [vmem:[%s495_s21] sm:$0x7] }
 0x107   : > { %v872_v62 = vsel %vm862_vm12, nan, %v871_v34  ;;  %v1186_v45 = vsel %vm862_vm12, nan, %v1185_v61 }
 0x108   : > { %1244 = vmatpush.msrb.mxu1 %v1186_v45  ;;  %1778 = vmatpush.msra.mxu3 %v1186_v45 }
 0x109   : > { %1746 = vmatmul.msk.f32.vlgmr.msrb.gmra.mxu1 %vm1187_vm5, %v873_v23  ;;  %1747 = vmatmul.msk.f32.vlgmr.msra.gmra.mxu3 %vm1187_vm5, %v874_v35 }
 0x10a   : > { %1314 = vmatpush.msra.mxu1 %v872_v62  ;;  %1751 = vmatmul.msk.f32.gmra.mxu0 %vm1187_vm5, %v562_v25 }
 0x10b   : > { %1745 = vmatmul.msk.f32.gmra.mxu2 %vm1187_vm5, %v876_v36 }
 0x10e   : > { %1388 = vperm.xlu2 %1812, %v1374_v56  }
 0x111   : > { %1754 = vmatmul.msk.f32.vlgmr.msra.gmra.mxu1 %vm1187_vm5, %v561_v49  ;;  %1748 = vmatmul.msk.f32.gmra.mxu3 %vm1187_vm5, %v875_v27 }
 0x112   : > { %1752 = vmatmul.msk.f32.gmra.mxu0 %vm1187_vm5, %v563_v0 }
 0x116   : > { %1479 = vperm.xlu2 %1812, %v1476_v7  }
 0x119   : > { %1755 = vmatmul.msk.f32.gmra.mxu1 %vm1187_vm5, %v562_v25  ;;  %1749 = vmatmul.msk.f32.gmra.mxu3 %vm1187_vm5, %v876_v36 }
 0x11a   : > { %1753 = vmatmul.msk.f32.gmra.mxu0 %vm1187_vm5, %v564_v15 }
 0x121   : > { %1756 = vmatmul.msk.f32.gmra.mxu1 %vm1187_vm5, %v563_v0 }
 0x129   : > { %1757 = vmatmul.msk.f32.gmra.mxu1 %vm1187_vm5, %v564_v15 }
 0x146   : > { %v1340_v33 = vpop.permute.xlu1 %1339 }
 0x155   : > { %v1350_v18 = vpop.permute.xlu0 %1349  ;;  %v1335_v30 = vpop.permute.xlu1 %1334 }
 0x15d   : > { %v1345_v22 = vpop.permute.xlu0 %1344 }
 0x160   : > { %v1394_v42 = vpop.permute.xlu2 %1393 }
 0x165   : > { %v1384_v63 = vpop.permute.xlu0 %1383 }
 0x168   : > { %v1389_v45 = vpop.permute.xlu2 %1388 }
 0x176   : > { %v1217_v1 = vpop.f32.mrf.mxu0 }
 0x17c   : > { %v1220_v2 = vpop.f32.mrf.mxu2 }
 0x17e   : > { %v1287_v4 = vpop.f32.mrf.mxu0 }
 0x17f   : > { %v1288_v26 = vadd.f32 %v1287_v4, %v1217_v1  ;;  %v1379_v1 = vpop.permute.xlu1 %1378 }
 0x181   : > { %v1352_v35 = vadd.f32 %v1335_v30, %v1288_v26 }
 0x183   : > { %v1360_v59 = vmax.f32 %v1352_v35, 0.0 }
 0x184   : > { %v1223_v9 = vpop.f32.mrf.mxu2 }
 0x186   : > { %v1246_v3 = vpop.f32.mrf.mxu1 }
 0x187   : > { %v1290_v8 = vpop.f32.mrf.mxu0 }
 0x188   : > { %v1291_v19 = vadd.f32 %v1290_v8, %v1220_v2 }
 0x18a   : > { %v1354_v23 = vadd.f32 %v1340_v33, %v1291_v19 }
 0x18c   : > { %v1249_v17 = vpop.f32.mrf.mxu3  ;;  %v1362_v39 = vmax.f32 %v1354_v23, 0.0 }
 0x18e   : > { %v1316_v10 = vpop.f32.mrf.mxu1  ;;  %v1226_v12 = vpop.f32.mrf.mxu2 }
 0x18f   : > { %v1293_v16 = vpop.f32.mrf.mxu0  ;;  %v1317_v31 = vadd.f32 %v1316_v10, %v1246_v3  ;;  %v1475_v10 = vld [vmem:[%s491_s24] sm:$0x7] }
 0x190   : > { %v1294_v14 = vadd.f32 %v1293_v16, %v1223_v9 }
 0x191   : > { %v1353_v51 = vadd.f32 %v1335_v30, %v1317_v31 }
 0x192   : > { %v1356_v29 = vadd.f32 %v1345_v22, %v1294_v14 }
 0x193   : > { %v1361_v54 = vmax.f32 %v1353_v51, 0.0 }
 0x194   : > { %v1252_v28 = vpop.f32.mrf.mxu3  ;;  %v1364_v38 = vmax.f32 %v1356_v29, 0.0 }
 0x196   : > { %v1319_v13 = vpop.f32.mrf.mxu1 }
 0x197   : > { %v1296_v11 = vpop.f32.mrf.mxu0  ;;  %v1320_v47 = vadd.f32 %v1319_v13, %v1249_v17 }
 0x198   : > { %v1297_v21 = vadd.f32 %v1296_v11, %v1226_v12 }
 0x199   : > { %v1355_v27 = vadd.f32 %v1340_v33, %v1320_v47 }
 0x19a   : > { %v1358_v41 = vadd.f32 %v1350_v18, %v1297_v21 }
 0x19b   : > { %v1363_v53 = vmax.f32 %v1355_v27, 0.0 }
 0x19c   : > { %v1366_v32 = vmax.f32 %v1358_v41, 0.0  ;;  %v1255_v40 = vpop.f32.mrf.mxu3 }
 0x19e   : > { %v1322_v37 = vpop.f32.mrf.mxu1  ;;  %1421 = vmatpush.msrb.mxu2 %v1366_v32 }
 0x19f   : > { %v1323_v20 = vadd.f32 %v1322_v37, %v1252_v28 }
 0x1a0   : > { %1422 = vmatpush.msrb.mxu2 %v1364_v38 }
 0x1a1   : > { %v1357_v48 = vadd.f32 %v1345_v22, %v1323_v20  ;;  %v1480_v22 = vpop.permute.xlu2 %1479 }
 0x1a2   : > { %1423 = vmatpush.msrb.mxu2 %v1362_v39 }
 0x1a3   : > { %v1365_v52 = vmax.f32 %v1357_v48, 0.0 }
 0x1a4   : > { %1424 = vmatpush.msrb.mxu2 %v1360_v59 }
 0x1a5   : > { %1758 = vmatmul.msk.f32.vlgmr.msrb.gmra.mxu2 %vm1396_vm13, %v1368_v43 }
 0x1a6   : > { %v1325_v44 = vpop.f32.mrf.mxu1 }
 0x1a7   : > { %v1326_v5 = vadd.f32 %v1325_v44, %v1255_v40 }
 0x1a9   : > { %v1359_v24 = vadd.f32 %v1350_v18, %v1326_v5 }
 0x1ab   : > { %v1367_v49 = vmax.f32 %v1359_v24, 0.0 }
 0x1ad   : > { %1450 = vmatpush.msrb.mxu3 %v1367_v49  ;;  %1759 = vmatmul.msk.f32.gmra.mxu2 %vm1396_vm13, %v1369_v46 }
 0x1af   : > { %1451 = vmatpush.msrb.mxu3 %v1365_v52 }
 0x1b1   : > { %1452 = vmatpush.msrb.mxu3 %v1363_v53 }
 0x1b3   : > { %1453 = vmatpush.msrb.mxu3 %v1361_v54 }
 0x1b4   : > { %1762 = vmatmul.msk.f32.vlgmr.msrb.gmra.mxu3 %vm1396_vm13, %v1368_v43 }
 0x1b5   : > { %1760 = vmatmul.msk.f32.gmra.mxu2 %vm1396_vm13, %v1370_v55 }
 0x1bc   : > { %1763 = vmatmul.msk.f32.gmra.mxu3 %vm1396_vm13, %v1369_v46 }
 0x1bd   : > { %1761 = vmatmul.msk.f32.gmra.mxu2 %vm1396_vm13, %v1371_v57 }
 0x1c4   : > { %1764 = vmatmul.msk.f32.gmra.mxu3 %vm1396_vm13, %v1370_v55 }
 0x1cc   : > { %1765 = vmatmul.msk.f32.gmra.mxu3 %vm1396_vm13, %v1371_v57 }
 0x228   : > { %v1426_v58 = vpop.f32.mrf.mxu2 }
 0x229   : > { %v1427_v4 = vadd.f32 %v1426_v58, %v1379_v1 }
 0x22b   : > { %v1467_v9 = vmax.f32 %v1427_v4, 0.0 }
 0x230   : > { %v1429_v60 = vpop.f32.mrf.mxu2 }
 0x231   : > { %v1430_v0 = vadd.f32 %v1429_v60, %v1384_v63 }
 0x233   : > { %v1469_v3 = vmax.f32 %v1430_v0, 0.0 }
 0x237   : > { %v1455_v34 = vpop.f32.mrf.mxu3 }
 0x238   : > { %v1432_v61 = vpop.f32.mrf.mxu2  ;;  %v1456_v13 = vadd.f32 %v1455_v34, %v1379_v1 }
 0x239   : > { %v1433_v36 = vadd.f32 %v1432_v61, %v1389_v45 }
 0x23a   : > { %v1468_v19 = vmax.f32 %v1456_v13, 0.0 }
 0x23b   : > { %v1471_v2 = vmax.f32 %v1433_v36, 0.0 }
 0x23f   : > { %v1458_v62 = vpop.f32.mrf.mxu3 }
 0x240   : > { %v1435_v25 = vpop.f32.mrf.mxu2  ;;  %v1459_v33 = vadd.f32 %v1458_v62, %v1384_v63 }
 0x241   : > { %v1436_v6 = vadd.f32 %v1435_v25, %v1394_v42 }
 0x242   : > { %v1470_v11 = vmax.f32 %v1459_v33, 0.0 }
 0x243   : > { %v1473_v15 = vmax.f32 %v1436_v6, 0.0 }
 0x245   : > { %1497 = vmatpush.msrb.mxu0 %v1473_v15 }
 0x247   : > { %v1461_v8 = vpop.f32.mrf.mxu3  ;;  %1498 = vmatpush.msrb.mxu0 %v1471_v2 }
 0x248   : > { %v1462_v16 = vadd.f32 %v1461_v8, %v1389_v45 }
 0x249   : > { %1499 = vmatpush.msrb.mxu0 %v1469_v3 }
 0x24a   : > { %v1472_v14 = vmax.f32 %v1462_v16, 0.0 }
 0x24b   : > { %1500 = vmatpush.msrb.mxu0 %v1467_v9 }
 0x24c   : > { %1766 = vmatmul.msk.f32.vlgmr.msrb.gmra.mxu0 %vm1396_vm13, %v1475_v10 }
 0x24f   : > { %v1464_v18 = vpop.f32.mrf.mxu3 }
 0x250   : > { %v1465_v17 = vadd.f32 %v1464_v18, %v1394_v42 }
 0x252   : > { %v1474_v12 = vmax.f32 %v1465_v17, 0.0 }
 0x254   : > { %1517 = vmatpush.msrb.mxu1 %v1474_v12 }
 0x256   : > { %1518 = vmatpush.msrb.mxu1 %v1472_v14 }
 0x258   : > { %1519 = vmatpush.msrb.mxu1 %v1470_v11 }
 0x25a   : > { %1520 = vmatpush.msrb.mxu1 %v1468_v19 }
 0x25b   : > { %1767 = vmatmul.msk.f32.vlgmr.msrb.gmra.mxu1 %vm1396_vm13, %v1475_v10 }
 0x2c9   : > { %v1502_v21 = vpop.f32.mrf.mxu0 }
 0x2ca   : > { %v1503_v28 = vadd.f32 %v1502_v21, %v1480_v22 }
 0x2cc   : > { %v1525_v30 = vadd.f32 0.5, %v1503_v28 }
 0x2d8   : > { %v1522_v26 = vpop.f32.mrf.mxu1 }
 0x2d9   : > { %v1523_v41 = vadd.f32 %v1522_v26, %v1480_v22 }
 0x2db   : > { %v1526_v29 = vadd.f32 0.5, %v1523_v41 }
 0x2dd   : > { %v1529_v32 = vrot.slane %v1526_v29, 4 }
 0x2df   : > { %v1531_v23 = vsel %vm1530_vm14, %v1525_v30, %v1529_v32 }
 0x2e0   : > { %1533 = vst [vmem:[%s504_s27] sm:$0x77] %v1531_v23 }
 0x2e1 PF: > { %s19_s11 = sadd.s32 1, %s1835_s11   ;;  %s2212_s30 = smov %s1831_s10 }
 0x2e2   : > { %p16_p5 = scmp.ge.s32.totalorder %s19_s11, 4   ;;  %s2213_s10 = smov %s2215_s12 }
 0x2e4   :  { %18 = sbr.rel (!%p16_p5) target bundleno = 2 (0x2), region = 107 }

</bundles_post_ra>
